<compile_context>
chip_gen: v5e
topology: v5e:2x2
jax: 0.10.0
libtpu: 0.0.40
codegen_flags: <defaults>
</compile_context>

<pallas_src>
import math
from functools import lru_cache, partial

import numpy as np
import jax
import jax.numpy as jnp
from jax import lax
from jax.experimental import pallas as pl
from jax.experimental.pallas import tpu as pltpu


# ----------------------------- fused Pallas kernel ---------------------------

def _fused_attn_kernel(x_ref, w_attn_ref, b_attn_ref, w_proj_ref, b_proj_ref,
                       score_bias_ref, head_mask_ref, o_ref, *,
                       n_heads, head_dim, n_rows):
    """Single invocation handles the whole batch: x_ref/o_ref are (B*T, C)."""
    H, D, BT = n_heads, head_dim, n_rows
    C = H * D

    x = x_ref[...]                                            # (BT, C)

    # (1) QKV projection: one lane-dense MXU matmul for Q, K and V together.
    #     The K columns of w_attn/b_attn were pre-scaled by 1/sqrt(D).
    qkv = jnp.dot(x, w_attn_ref[...], preferred_element_type=jnp.float32)
    qkv = qkv + b_attn_ref[...]                               # (BT, 3C)
    q = qkv[:, 0 * C:1 * C]      # (BT, C)  SDPA "key"   (reference swaps k/q)
    k = qkv[:, 1 * C:2 * C]      # (BT, C)  SDPA "query" (already pre-scaled)
    v = qkv[:, 2 * C:3 * C]      # (BT, C)

    head_mask = head_mask_ref[...]                            # (H*BT, C), {0,1}

    # (2) Heads batched on the sublane axis: replicate K per head and zero the
    #     lanes that do not belong to that head, so ONE full-C contraction
    #     against Q yields all heads' score blocks stacked along rows.
    k_exp = jnp.concatenate([k] * H, axis=0) * head_mask      # (H*BT, C)
    s = lax.dot_general(k_exp, q, (((1,), (1,)), ((), ())),   # no explicit q.T
                        preferred_element_type=jnp.float32)   # (H*BT, BT)
    s = s + score_bias_ref[...]          # causal + batch block-diagonal mask

    # (3) Numerically stable softmax over keys, all f32; exact normalization.
    m = jnp.max(s, axis=-1, keepdims=True)
    p = jnp.exp(s - m)
    p = p / jnp.sum(p, axis=-1, keepdims=True)                # (H*BT, BT)

    # (4) ONE PV matmul for all heads; keep each row block's own head lanes
    #     and fold the H row blocks back down to the merged (BT, C) layout.
    pv = jnp.dot(p, v, preferred_element_type=jnp.float32)    # (H*BT, C)
    pv = pv * head_mask
    y = pv[0:BT, :]
    for h in range(1, H):                       # static, vreg-aligned slices
        y = y + pv[h * BT:(h + 1) * BT, :]                    # (BT, C)

    # (5) Output projection fused in the same kernel; single (BT, C) store.
    out = jnp.dot(y, w_proj_ref[...], preferred_element_type=jnp.float32)
    o_ref[...] = out + b_proj_ref[...]


# ------------------------------- mask constants -------------------------------

@lru_cache(maxsize=None)
def _build_masks(B, T, H, D):
    """Combined masks, built once per shape (numpy -> device constants).

    score_bias (H*B*T, B*T): additive mask for the score matrix.  Row
      r = h*B*T + b*T + t is (head h, batch b, query pos t); column
      j = b'*T + t' is (batch b', key pos t').  Valid iff b' == b and
      t' <= t (causal; K is the SDPA query in this module).
    head_mask (H*B*T, C): 1.0 where column c belongs to row r's head
      (c // D == r // (B*T)); selects head lanes of K before the score
      matmul and of P@V after it.
    """
    BT, C, R = B * T, H * D, H * B * T
    r = np.arange(R)
    i = r % BT
    qb, qt = i // T, i % T
    j = np.arange(BT)
    kb, kt = j // T, j % T
    valid = (qb[:, None] == kb[None, :]) & (kt[None, :] <= qt[:, None])
    score_bias = np.where(valid, 0.0, -1e30).astype(np.float32)
    head_mask = (r[:, None] // BT == np.arange(C)[None, :] // D).astype(np.float32)
    return score_bias, head_mask


# --------------------------------- wrapper ------------------------------------

def flash_self_attention(x, params, n_heads):
    """Equivalent of FlashSelfAttention.forward.  x: (B, T, C) float32."""
    B, T, C = x.shape
    H = n_heads
    assert C % H == 0
    D = C // H
    BT, R = B * T, H * B * T

    # Parameter prep (one-time transform; constant-folded under jit): fold the
    # 1/sqrt(D) score scale into the K projection columns and bias.
    scale = 1.0 / math.sqrt(D)
    w_attn = params["w_attn"].at[:, C:2 * C].multiply(scale)            # (C, 3C)
    b_attn = params["b_attn"].at[C:2 * C].multiply(scale).reshape(1, 3 * C)
    w_proj = params["w_proj"]                                            # (C, C)
    b_proj = params["b_proj"].reshape(1, C)

    score_bias, head_mask = _build_masks(B, T, H, D)
    score_bias = jnp.asarray(score_bias)                                 # (R, BT)
    head_mask = jnp.asarray(head_mask)                                   # (R, C)

    x2 = x.reshape(BT, C)        # fold batch into rows (contiguous, free)

    kernel = partial(_fused_attn_kernel, n_heads=H, head_dim=D, n_rows=BT)
    out = pl.pallas_call(
        kernel,
        out_shape=jax.ShapeDtypeStruct((BT, C), jnp.float32),
        grid=(1,),   # single step: per-step pipeline overhead ~ total compute here
        in_specs=[
            pl.BlockSpec((BT, C), lambda i: (0, 0)),        # x (batch folded)
            pl.BlockSpec((C, 3 * C), lambda i: (0, 0)),     # w_attn (K cols scaled)
            pl.BlockSpec((1, 3 * C), lambda i: (0, 0)),     # b_attn
            pl.BlockSpec((C, C), lambda i: (0, 0)),         # w_proj
            pl.BlockSpec((1, C), lambda i: (0, 0)),         # b_proj
            pl.BlockSpec((R, BT), lambda i: (0, 0)),        # score_bias
            pl.BlockSpec((R, C), lambda i: (0, 0)),         # head_mask
        ],
        out_specs=pl.BlockSpec((BT, C), lambda i: (0, 0)),
        compiler_params=pltpu.CompilerParams(
            # Single grid step: megacore sharding (v7x) would not amortize its
            # per-step overhead at these shapes (per perf review).
            dimension_semantics=("arbitrary",),
        ),
    )(x2, w_attn, b_attn, w_proj, b_proj, score_bias, head_mask)
    return out.reshape(B, T, C)


# ------------------------------ pure-JAX reference ---------------------------

def reference_forward(x, params, n_heads):
    B, T, C = x.shape
    D = C // n_heads
    qkv = x.reshape(B * T, C) @ params["w_attn"] + params["b_attn"]
    qkv = qkv.reshape(B, T, 3 * C)
    q, k, v = jnp.split(qkv, 3, axis=2)
    rs = lambda t: t.reshape(B, T, n_heads, D).transpose(0, 2, 1, 3)
    q, k, v = rs(q), rs(k), rs(v)
    s = jnp.einsum("bhqd,bhkd->bhqk", k, q) / math.sqrt(D)   # (k,q,v) swap
    mask = jnp.tril(jnp.ones((T, T), dtype=bool))
    s = jnp.where(mask, s, -jnp.inf)
    p = jax.nn.softmax(s, axis=-1)
    y = jnp.einsum("bhqk,bhkd->bhqd", p, v)
    y = y.transpose(0, 2, 1, 3).reshape(B, T, C)
    return (y.reshape(B * T, C) @ params["w_proj"] + params["b_proj"]).reshape(B, T, C)


# ------------------------------------ main -----------------------------------

def init_params(key, emb_dim):
    """Deterministic init matching nn.Linear default (uniform +-1/sqrt(fan_in)).
    Weights stored transposed relative to PyTorch: (in, out) so y = x @ W + b."""
    k1, k2, k3, k4 = jax.random.split(key, 4)
    bound = 1.0 / math.sqrt(emb_dim)
    return {
        "w_attn": jax.random.uniform(k1, (emb_dim, 3 * emb_dim), jnp.float32, -bound, bound),
        "b_attn": jax.random.uniform(k2, (3 * emb_dim,), jnp.float32, -bound, bound),
        "w_proj": jax.random.uniform(k3, (emb_dim, emb_dim), jnp.float32, -bound, bound),
        "b_proj": jax.random.uniform(k4, (emb_dim,), jnp.float32, -bound, bound),
    }


if __name__ == "__main__":
    # TrfConfig(emb_dim=32, context_size=8, head_size=8, n_heads=4, ...)
    B, T, C, H = 2, 8, 32, 4

    key = jax.random.PRNGKey(0)
    kx, kp = jax.random.split(key)
    x = jax.random.normal(kx, (B, T, C), dtype=jnp.float32)
    params = init_params(kp, C)

    out = flash_self_attention(x, params, H)
    out = jax.block_until_ready(out)

    ref = reference_forward(x, params, H)
    assert out.shape == (B, T, C)
    # Kernel is f32 end-to-end with exact softmax normalization (approximate
    # reciprocal removed per review).  The tolerance only covers XLA's default
    # reduced-precision matmul passes in the pure-JAX reference vs the
    # kernel's f32-preferred MXU dots.
    assert jnp.allclose(out, ref, atol=1e-2, rtol=1e-2), "mismatch vs reference"

    print("KERNEL_OK")
</pallas_src>

<mosaic_0001>
module attributes {stable_mosaic.version = 11 : i64} {
  func.func @_fused_attn_kernel(%arg0: i32, %arg1: memref<16x32xf32, #tpu.memory_space<vmem>>, %arg2: memref<32x96xf32, #tpu.memory_space<vmem>>, %arg3: memref<1x96xf32, #tpu.memory_space<vmem>>, %arg4: memref<32x32xf32, #tpu.memory_space<vmem>>, %arg5: memref<1x32xf32, #tpu.memory_space<vmem>>, %arg6: memref<64x16xf32, #tpu.memory_space<vmem>>, %arg7: memref<64x32xf32, #tpu.memory_space<vmem>>, %arg8: memref<16x32xf32, #tpu.memory_space<vmem>>) attributes {dimension_semantics = [#tpu.dimension_semantics<arbitrary>], iteration_bounds = array<i64: 1>, scalar_prefetch = 0 : i64, scratch_operands = 0 : i64, tpu.core_type = #tpu.core_type<tc>, window_params = [{pipeline_mode = #tpu.pipeline_mode<synchronous>, transform_indices = @transform_0, window_bounds = array<i64: 16, 32>}, {pipeline_mode = #tpu.pipeline_mode<synchronous>, transform_indices = @transform_1, window_bounds = array<i64: 32, 96>}, {pipeline_mode = #tpu.pipeline_mode<synchronous>, transform_indices = @transform_2, window_bounds = array<i64: 1, 96>}, {pipeline_mode = #tpu.pipeline_mode<synchronous>, transform_indices = @transform_3, window_bounds = array<i64: 32, 32>}, {pipeline_mode = #tpu.pipeline_mode<synchronous>, transform_indices = @transform_4, window_bounds = array<i64: 1, 32>}, {pipeline_mode = #tpu.pipeline_mode<synchronous>, transform_indices = @transform_5, window_bounds = array<i64: 64, 16>}, {pipeline_mode = #tpu.pipeline_mode<synchronous>, transform_indices = @transform_6, window_bounds = array<i64: 64, 32>}, {pipeline_mode = #tpu.pipeline_mode<synchronous>, transform_indices = @transform_7, window_bounds = array<i64: 16, 32>}]} {
    %c0 = arith.constant 0 : index
    %c0_0 = arith.constant 0 : index
    %0 = vector.load %arg1[%c0, %c0_0] : memref<16x32xf32, #tpu.memory_space<vmem>>, vector<16x32xf32>
    %c0_1 = arith.constant 0 : index
    %c0_2 = arith.constant 0 : index
    %1 = vector.load %arg2[%c0_1, %c0_2] : memref<32x96xf32, #tpu.memory_space<vmem>>, vector<32x96xf32>
    %cst = arith.constant dense<0.000000e+00> : vector<16x96xf32>
    %2 = tpu.matmul %0, %1, %cst {dimension_numbers = #tpu.dot_dimension_numbers<[1], [0], [0], [1], [0, 0, 1, 1], [], []>} : vector<16x32xf32>, vector<32x96xf32>, vector<16x96xf32> -> vector<16x96xf32>
    %c0_3 = arith.constant 0 : index
    %c0_4 = arith.constant 0 : index
    %3 = vector.load %arg3[%c0_3, %c0_4] : memref<1x96xf32, #tpu.memory_space<vmem>>, vector<1x96xf32>
    %4 = vector.broadcast %3 : vector<1x96xf32> to vector<16x96xf32>
    %5 = arith.addf %2, %4 : vector<16x96xf32>
    %6 = vector.extract_strided_slice %5 {offsets = [0, 0], sizes = [16, 32], strides = [1, 1]} : vector<16x96xf32> to vector<16x32xf32>
    %7 = vector.extract_strided_slice %5 {offsets = [0, 32], sizes = [16, 32], strides = [1, 1]} : vector<16x96xf32> to vector<16x32xf32>
    %8 = vector.extract_strided_slice %5 {offsets = [0, 64], sizes = [16, 32], strides = [1, 1]} : vector<16x96xf32> to vector<16x32xf32>
    %c0_5 = arith.constant 0 : index
    %c0_6 = arith.constant 0 : index
    %9 = vector.load %arg7[%c0_5, %c0_6] : memref<64x32xf32, #tpu.memory_space<vmem>>, vector<64x32xf32>
    %10 = tpu.concatenate %7, %7, %7, %7 in 0 : vector<16x32xf32>, vector<16x32xf32>, vector<16x32xf32>, vector<16x32xf32> -> vector<64x32xf32>
    %11 = arith.mulf %10, %9 : vector<64x32xf32>
    %cst_7 = arith.constant dense<0.000000e+00> : vector<64x16xf32>
    %12 = tpu.matmul %11, %6, %cst_7 {dimension_numbers = #tpu.dot_dimension_numbers<[1], [1], [0], [0], [0, 0, 1, 0], [], []>} : vector<64x32xf32>, vector<16x32xf32>, vector<64x16xf32> -> vector<64x16xf32>
    %c0_8 = arith.constant 0 : index
    %c0_9 = arith.constant 0 : index
    %13 = vector.load %arg6[%c0_8, %c0_9] : memref<64x16xf32, #tpu.memory_space<vmem>>, vector<64x16xf32>
    %14 = arith.addf %12, %13 : vector<64x16xf32>
    %cst_10 = arith.constant dense<0xFF800000> : vector<64xf32>
    %15 = vector.multi_reduction <maximumf>, %14, %cst_10 [1] : vector<64x16xf32> to vector<64xf32>
    %16 = vector.shape_cast %15 : vector<64xf32> to vector<64x1xf32>
    %17 = vector.broadcast %16 : vector<64x1xf32> to vector<64x16xf32>
    %18 = arith.subf %14, %17 : vector<64x16xf32>
    %19 = math.exp %18 : vector<64x16xf32>
    %cst_11 = arith.constant dense<0.000000e+00> : vector<64xf32>
    %20 = vector.multi_reduction <add>, %19, %cst_11 [1] : vector<64x16xf32> to vector<64xf32>
    %21 = vector.shape_cast %20 : vector<64xf32> to vector<64x1xf32>
    %22 = vector.broadcast %21 : vector<64x1xf32> to vector<64x16xf32>
    %23 = arith.divf %19, %22 : vector<64x16xf32>
    %cst_12 = arith.constant dense<0.000000e+00> : vector<64x32xf32>
    %24 = tpu.matmul %23, %8, %cst_12 {dimension_numbers = #tpu.dot_dimension_numbers<[1], [0], [0], [1], [0, 0, 1, 1], [], []>} : vector<64x16xf32>, vector<16x32xf32>, vector<64x32xf32> -> vector<64x32xf32>
    %25 = arith.mulf %24, %9 : vector<64x32xf32>
    %26 = vector.extract_strided_slice %25 {offsets = [0, 0], sizes = [16, 32], strides = [1, 1]} : vector<64x32xf32> to vector<16x32xf32>
    %27 = vector.extract_strided_slice %25 {offsets = [16, 0], sizes = [16, 32], strides = [1, 1]} : vector<64x32xf32> to vector<16x32xf32>
    %28 = arith.addf %26, %27 : vector<16x32xf32>
    %29 = vector.extract_strided_slice %25 {offsets = [32, 0], sizes = [16, 32], strides = [1, 1]} : vector<64x32xf32> to vector<16x32xf32>
    %30 = arith.addf %28, %29 : vector<16x32xf32>
    %31 = vector.extract_strided_slice %25 {offsets = [48, 0], sizes = [16, 32], strides = [1, 1]} : vector<64x32xf32> to vector<16x32xf32>
    %32 = arith.addf %30, %31 : vector<16x32xf32>
    %c0_13 = arith.constant 0 : index
    %c0_14 = arith.constant 0 : index
    %33 = vector.load %arg4[%c0_13, %c0_14] : memref<32x32xf32, #tpu.memory_space<vmem>>, vector<32x32xf32>
    %cst_15 = arith.constant dense<0.000000e+00> : vector<16x32xf32>
    %34 = tpu.matmul %32, %33, %cst_15 {dimension_numbers = #tpu.dot_dimension_numbers<[1], [0], [0], [1], [0, 0, 1, 1], [], []>} : vector<16x32xf32>, vector<32x32xf32>, vector<16x32xf32> -> vector<16x32xf32>
    %c0_16 = arith.constant 0 : index
    %c0_17 = arith.constant 0 : index
    %35 = vector.load %arg5[%c0_16, %c0_17] : memref<1x32xf32, #tpu.memory_space<vmem>>, vector<1x32xf32>
    %36 = vector.broadcast %35 : vector<1x32xf32> to vector<16x32xf32>
    %37 = arith.addf %34, %36 : vector<16x32xf32>
    %c0_18 = arith.constant 0 : index
    %c0_19 = arith.constant 0 : index
    %38 = vector.load %arg8[%c0_18, %c0_19] : memref<16x32xf32, #tpu.memory_space<vmem>>, vector<16x32xf32>
    tpu.vector_store %arg8[%c0_18, %c0_19], %37 {strides = array<i32>} : memref<16x32xf32, #tpu.memory_space<vmem>>, vector<16x32xf32>,
    return
  }
  func.func @transform_0(%arg0: i32) -> (i32, i32) {
    %c0_i32 = arith.constant 0 : i32
    %c0_i32_0 = arith.constant 0 : i32
    %c0_i32_1 = arith.constant 0 : i32
    return %c0_i32, %c0_i32_0 : i32, i32
  }
  func.func @transform_1(%arg0: i32) -> (i32, i32) {
    %c0_i32 = arith.constant 0 : i32
    %c0_i32_0 = arith.constant 0 : i32
    %c0_i32_1 = arith.constant 0 : i32
    return %c0_i32, %c0_i32_0 : i32, i32
  }
  func.func @transform_2(%arg0: i32) -> (i32, i32) {
    %c0_i32 = arith.constant 0 : i32
    %c0_i32_0 = arith.constant 0 : i32
    %c0_i32_1 = arith.constant 0 : i32
    return %c0_i32, %c0_i32_0 : i32, i32
  }
  func.func @transform_3(%arg0: i32) -> (i32, i32) {
    %c0_i32 = arith.constant 0 : i32
    %c0_i32_0 = arith.constant 0 : i32
    %c0_i32_1 = arith.constant 0 : i32
    return %c0_i32, %c0_i32_0 : i32, i32
  }
  func.func @transform_4(%arg0: i32) -> (i32, i32) {
    %c0_i32 = arith.constant 0 : i32
    %c0_i32_0 = arith.constant 0 : i32
    %c0_i32_1 = arith.constant 0 : i32
    return %c0_i32, %c0_i32_0 : i32, i32
  }
  func.func @transform_5(%arg0: i32) -> (i32, i32) {
    %c0_i32 = arith.constant 0 : i32
    %c0_i32_0 = arith.constant 0 : i32
    %c0_i32_1 = arith.constant 0 : i32
    return %c0_i32, %c0_i32_0 : i32, i32
  }
  func.func @transform_6(%arg0: i32) -> (i32, i32) {
    %c0_i32 = arith.constant 0 : i32
    %c0_i32_0 = arith.constant 0 : i32
    %c0_i32_1 = arith.constant 0 : i32
    return %c0_i32, %c0_i32_0 : i32, i32
  }
  func.func @transform_7(%arg0: i32) -> (i32, i32) {
    %c0_i32 = arith.constant 0 : i32
    %c0_i32_0 = arith.constant 0 : i32
    %c0_i32_1 = arith.constant 0 : i32
    return %c0_i32, %c0_i32_0 : i32, i32
  }
}

</mosaic_0001>

<bundles_post_ra>
// kernel: tpu_custom_call.1
= control target key start
LH: loop header
LB: loop body
LE: loop exit
PB: predicated region body
PF: predicated region fallthrough
CT: control target
= control target key end

     0   :  { %s642_s30 = smov 32   ;;  %vm37_vm0 = vcmask 261120   ;;  %s916_s0 = inlined_call_operand.vmem [shape: f32[16,32], index: 0, kind: input, shape index: {}]   ;;  %s917_s1 = inlined_call_operand.vmem [shape: f32[32,96], index: 1, kind: input, shape index: {}]   ;;  %s918_s2 = inlined_call_operand.vmem [shape: f32[1,96], index: 2, kind: input, shape index: {}]   ;;  %s919_s3 = inlined_call_operand.vmem [shape: f32[32,32], index: 3, kind: input, shape index: {}]   ;;  %s920_s4 = inlined_call_operand.vmem [shape: f32[1,32], index: 4, kind: input, shape index: {}]   ;;  %s921_s5 = inlined_call_operand.vmem [shape: f32[64,16], index: 5, kind: input, shape index: {}]   ;;  %s922_s6 = inlined_call_operand.vmem [shape: f32[64,32], index: 6, kind: input, shape index: {}]   ;;  %s923_s7 = inlined_call_operand.hbm [shape: f32[16,32], index: 7, kind: output, shape index: {}]  }
   0x1   :  { %v32_v0 = vld [vmem:[%s917_s1 + $0x18] sm:$0xff]  ;;  %v31_v1 = vld [vmem:[%s917_s1 + $0x10] sm:$0xff]  ;;  %v697_v2 = vld [vmem:[%s922_s6] sm:$0xff] }
   0x2   :  { %56 = vmatpush.msra.mxu0 %v32_v0  ;;  %83 = vrot.lane.b32.xlu0 %v697_v2, %s642_s30  ;;  %v30_v3 = vld [vmem:[%s917_s1 + $0x8] sm:$0xff]  ;;  %v706_v4 = vld [vmem:[%s922_s6 + $0x18] sm:$0xff]  ;;  %v712_v5 = vld [vmem:[%s922_s6 + $0x20] sm:$0xff] }
   0x3   :  { %89 = vrot.lane.b32.xlu1 %v706_v4, %s642_s30  ;;  %v29_v6 = vld [vmem:[%s917_s1] sm:$0xff]  ;;  %91 = vrot.lane.b32.xlu2 %v712_v5, %s642_s30 }
   0x4   :  { %57 = vmatpush.msra.mxu0 %v31_v1  ;;  %v27_v7 = vld [vmem:[%s916_s0] sm:$0xff] }
   0x6   :  { %58 = vmatpush.msra.mxu0 %v30_v3 }
   0x7   :  { %12 = vsyncpa [#allocation3], 0  ;;  %v724_v8 = vld [vmem:[%s922_s6 + $0x8] sm:$0xff]  ;;  %v730_v9 = vld [vmem:[%s922_s6 + $0x10] sm:$0xff]  ;;  %vm210_vm1 = vcmask 130048   ;;  %s533_s8 = sshll.u32 %s923_s7, 4  ;;  %s534_s8 = int_to_ptr.hbm [resolvable:$true] %s533_s8 }
   0x8   :  { %59 = vmatpush.msra.mxu0 %v29_v6  ;;  %v736_v10 = vld [vmem:[%s922_s6 + $0x28] sm:$0xff]  ;;  %v746_v12 = vld [vmem:[%s922_s6 + $0x30] sm:$0xff]  ;;  %v753_v13 = vld [vmem:[%s922_s6 + $0x38] sm:$0xff]  ;;  %s643_s6 = smov 96   ;;  %s646_s9 = smov 128  }
   0x9   :  { %545 = vmatmul.msk.f32.vlgmr.msra.gmra.mxu0 %vm37_vm0, %v27_v7  ;;  %v28_v11 = vld [vmem:[%s916_s0 + $0x8] sm:$0xff]  ;;  %v582_v16 = vld [vmem:[%s918_s2] ss:$0 sm:$0xff]  ;;  %v118_v53 = vld [vmem:[%s921_s5 + $0x18] sm:$0xff]  ;;  %s645_s0 = smov [#allocation2]   ;;  %s647_s10 = smov 8  }
   0xa   :  { %85 = vrot.lane.b32.xlu0 %v724_v8, %s642_s30  ;;  %v115_v44 = vld [vmem:[%s921_s5] sm:$0xff]  ;;  %v116_v48 = vld [vmem:[%s921_s5 + $0x8] sm:$0xff]  ;;  %v117_v54 = vld [vmem:[%s921_s5 + $0x10] sm:$0xff] }
   0xb   :  { %87 = vrot.lane.b32.xlu1 %v730_v9, %s642_s30  ;;  %93 = vrot.lane.b32.xlu2 %v736_v10, %s642_s30  ;;  %v119_v56 = vld [vmem:[%s921_s5 + $0x20] sm:$0xff]  ;;  %v120_v0 = vld [vmem:[%s921_s5 + $0x28] sm:$0xff] }
   0xc   :  { %v121_v7 = vld [vmem:[%s921_s5 + $0x30] sm:$0xff] }
  0x11   :  { %546 = vmatmul.msk.f32.gmra.mxu0 %vm37_vm0, %v28_v11 }
  0x12   :  { %95 = vrot.lane.b32.xlu0 %v746_v12, %s642_s30 }
  0x13   :  { %97 = vrot.lane.b32.xlu2 %v753_v13, %s642_s30 }
  0x5d   :  { %v92_v23 = vpop.permute.xlu2 %91 }
  0x65   :  { %v94_v31 = vpop.permute.xlu2 %93 }
  0x6d   :  { %v98_v34 = vpop.permute.xlu2 %97 }
  0x74   :  { %v84_v14 = vpop.permute.xlu0 %83 }
  0x75   :  { %v90_v15 = vpop.permute.xlu1 %89 }
  0x7c   :  { %v86_v17 = vpop.permute.xlu0 %85 }
  0x7d   :  { %v88_v19 = vpop.permute.xlu1 %87 }
  0x84   :  { %v96_v24 = vpop.permute.xlu0 %95 }
  0x86   :  { %v61_v18 = vpop.f32.mrf.mxu0 }
  0x87   :  { %v759_v20 = vadd.f32 %v582_v16, %v61_v18 }
  0x89   :  { %v109_v21 = vmul.f32 %v88_v19, %v759_v20  ;;  %v107_v22 = vmul.f32 %v84_v14, %v759_v20  ;;  %v113_v27 = vmul.f32 %v96_v24, %v759_v20  ;;  %v111_v32 = vmul.f32 %v92_v23, %v759_v20 }
  0x8b   :  { %135 = vrot.lane.b32.xlu2 %v109_v21, %s643_s6  ;;  %131 = vrot.lane.b32.xlu1 %v107_v22, %s643_s6 }
  0x8e   :  { %v64_v25 = vpop.f32.mrf.mxu0 }
  0x8f   :  { %v763_v26 = vadd.f32 %v582_v16, %v64_v25  ;;  %v122_v16 = vld [vmem:[%s921_s5 + $0x38] sm:$0xff]  ;;  %s644_s5 = smov 64  }
  0x91   :  { %547 = vmatpush.xpose.msk.msrb.mxu0 %vm37_vm0, %v763_v26  ;;  %567 = vmatpush.xpose.msk.msra.mxu1 %vm37_vm0, %v763_v26  ;;  %v108_v28 = vmul.f32 %v86_v17, %v763_v26  ;;  %v110_v29 = vmul.f32 %v90_v15, %v763_v26  ;;  %v577_v30 = vpack.i.bf16 %v759_v20, %v763_v26 }
  0x92   :  { %v112_v33 = vmul.f32 %v94_v31, %v763_v26  ;;  %v114_v35 = vmul.f32 %v98_v34, %v763_v26 }
  0x93   :  { %133 = vrot.lane.b32.xlu0 %v108_v28, %s643_s6  ;;  %143 = vrot.lane.b32.xlu2 %v113_v27, %s643_s6 }
  0x94   :  { %137 = vrot.lane.b32.xlu1 %v110_v29, %s643_s6 }
  0x95   :  { %548 = vmatpush.xpose.msk.msrb.mxu0 %vm37_vm0, %v759_v20  ;;  %568 = vmatpush.xpose.msk.msra.mxu1 %vm37_vm0, %v759_v20 }
  0x9b   :  { %139 = vrot.lane.b32.xlu0 %v111_v32, %s643_s6 }
  0x9c   :  { %141 = vrot.lane.b32.xlu1 %v112_v33, %s643_s6 }
  0xa3   :  { %145 = vrot.lane.b32.xlu0 %v114_v35, %s643_s6  ;;  %s531_s6 = sshll.u32 %s645_s0, 4  ;;  %s532_s6 = int_to_ptr.vmem [resolvable:$true] %s531_s6 }
  0xe5   :  { %v136_v39 = vpop.permute.xlu2 %135 }
  0xed   :  { %v144_v42 = vpop.permute.xlu2 %143 }
  0xfd   :  { %v132_v36 = vpop.permute.xlu1 %131 }
  0xfe   :  { %549 = vmatmul.msk.f32.vlgmr.msrb.gmra.mxu0 %vm37_vm0, %v132_v36 }
 0x105   :  { %v134_v37 = vpop.permute.xlu0 %133 }
 0x106   :  { %v138_v38 = vpop.permute.xlu1 %137  ;;  %550 = vmatmul.msk.f32.gmra.mxu0 %vm37_vm0, %v134_v37 }
 0x107   :  { %552 = vmatmul.msk.f32.vlgmr.msra.gmra.mxu1 %vm37_vm0, %v138_v38 }
 0x10d   :  { %v140_v40 = vpop.permute.xlu0 %139 }
 0x10e   :  { %551 = vmatmul.msk.f32.gmra.mxu0 %vm37_vm0, %v136_v39  ;;  %v142_v41 = vpop.permute.xlu1 %141 }
 0x10f   :  { %553 = vmatmul.msk.f32.gmra.mxu1 %vm37_vm0, %v140_v40 }
 0x115   :  { %v146_v43 = vpop.permute.xlu0 %145 }
 0x117   :  { %554 = vmatmul.msk.f32.gmra.mxu1 %vm37_vm0, %v142_v41 }
 0x11f   :  { %555 = vmatmul.msk.f32.gmra.mxu1 %vm37_vm0, %v144_v42 }
 0x127   :  { %556 = vmatmul.msk.f32.gmra.mxu1 %vm37_vm0, %v146_v43 }
 0x17b   :  { %v186_v45 = vpop.f32.mrf.mxu0 }
 0x17c   :  { %v187_v46 = vadd.f32 %v186_v45, %v115_v44 }
 0x17e   :  { %v211_v47 = vsel %vm210_vm1, %v187_v46, -inf }
 0x17f   :  { %212 = vmax.xlane.f32.xlu1 %v211_v47 }
 0x183   :  { %v189_v49 = vpop.f32.mrf.mxu0 }
 0x184   :  { %v190_v50 = vadd.f32 %v189_v49, %v116_v48  ;;  %v195_v51 = vpop.f32.mrf.mxu1 }
 0x185   :  { %v196_v55 = vadd.f32 %v195_v51, %v118_v53 }
 0x186   :  { %v214_v52 = vsel %vm210_vm1, %v190_v50, -inf }
 0x187   :  { %215 = vmax.xlane.f32.xlu2 %v214_v52  ;;  %v220_v62 = vsel %vm210_vm1, %v196_v55, -inf }
 0x18b   :  { %v192_v57 = vpop.f32.mrf.mxu0 }
 0x18c   :  { %v193_v58 = vadd.f32 %v192_v57, %v117_v54  ;;  %v198_v59 = vpop.f32.mrf.mxu1 }
 0x18d   :  { %v199_v60 = vadd.f32 %v198_v59, %v119_v56 }
 0x18e   :  { %v217_v61 = vsel %vm210_vm1, %v193_v58, -inf }
 0x18f   :  { %218 = vmax.xlane.f32.xlu0 %v217_v61  ;;  %v223_v63 = vsel %vm210_vm1, %v199_v60, -inf  ;;  %221 = vmax.xlane.f32.xlu2 %v220_v62 }
 0x190   :  { %224 = vmax.xlane.f32.xlu1 %v223_v63 }
 0x194   :  { %v201_v1 = vpop.f32.mrf.mxu1 }
 0x195   :  { %v202_v3 = vadd.f32 %v201_v1, %v120_v0 }
 0x197   :  { %v226_v6 = vsel %vm210_vm1, %v202_v3, -inf }
 0x198   :  { %227 = vmax.xlane.f32.xlu0 %v226_v6 }
 0x19c   :  { %v204_v11 = vpop.f32.mrf.mxu1 }
 0x19d   :  { %v205_v14 = vadd.f32 %v204_v11, %v121_v7 }
 0x19f   :  { %v229_v15 = vsel %vm210_vm1, %v205_v14, -inf }
 0x1a0   :  { %230 = vmax.xlane.f32.xlu2 %v229_v15 }
 0x1a4   :  { %v207_v17 = vpop.f32.mrf.mxu1 }
 0x1a5   :  { %v208_v18 = vadd.f32 %v207_v17, %v122_v16 }
 0x1a7   :  { %v232_v19 = vsel %vm210_vm1, %v208_v18, -inf }
 0x1a8   :  { %233 = vmax.xlane.f32.xlu1 %v232_v19 }
 0x1f2   :  { %v213_v21 = vpop.xlane.xlu1 %212 }
 0x1f3   :  { %v235_v22 = vsub.f32 %v187_v46, %v213_v21 }
 0x1f5   :  { %v243_v23 = vmul.f32 1.442695, %v235_v22 }
 0x1f7   :  { %584 = vpow2.f32 %v243_v23 }
 0x1fa   :  { %v216_v24 = vpop.xlane.xlu2 %215 }
 0x1fb   :  { %v236_v25 = vsub.f32 %v190_v50, %v216_v24 }
 0x1fd   :  { %v821_v27 = vpop.eup %584  ;;  %v245_v28 = vmul.f32 1.442695, %v236_v25 }
 0x1fe   :  { %v259_v29 = vsel %vm210_vm1, %v821_v27, 0.0 }
 0x1ff   :  { %586 = vpow2.f32 %v245_v28  ;;  %260 = vadd.xlane.f32.xlu2 %v259_v29 }
 0x202   :  { %v219_v31 = vpop.xlane.xlu0 %218  ;;  %v222_v32 = vpop.xlane.xlu2 %221 }
 0x203   :  { %v237_v33 = vsub.f32 %v193_v58, %v219_v31  ;;  %v238_v34 = vsub.f32 %v196_v55, %v222_v32  ;;  %v225_v35 = vpop.xlane.xlu1 %224 }
 0x204   :  { %v239_v39 = vsub.f32 %v199_v60, %v225_v35 }
 0x205   :  { %v825_v36 = vpop.eup %586  ;;  %v247_v37 = vmul.f32 1.442695, %v237_v33  ;;  %v249_v38 = vmul.f32 1.442695, %v238_v34 }
 0x206   :  { %v262_v40 = vsel %vm210_vm1, %v825_v36, 0.0  ;;  %v251_v41 = vmul.f32 1.442695, %v239_v39 }
 0x207   :  { %588 = vpow2.f32 %v247_v37  ;;  %263 = vadd.xlane.f32.xlu0 %v262_v40 }
 0x208   :  { %590 = vpow2.f32 %v249_v38 }
 0x209   :  { %592 = vpow2.f32 %v251_v41 }
 0x20b   :  { %v228_v42 = vpop.xlane.xlu0 %227 }
 0x20c   :  { %v240_v44 = vsub.f32 %v202_v3, %v228_v42 }
 0x20d   :  { %v829_v43 = vpop.eup %588 }
 0x20e   :  { %v831_v45 = vpop.eup %590  ;;  %v265_v46 = vsel %vm210_vm1, %v829_v43, 0.0  ;;  %v253_v48 = vmul.f32 1.442695, %v240_v44 }
 0x20f   :  { %266 = vadd.xlane.f32.xlu1 %v265_v46  ;;  %v268_v47 = vsel %vm210_vm1, %v831_v45, 0.0  ;;  %v837_v49 = vpop.eup %592 }
 0x210   :  { %269 = vadd.xlane.f32.xlu0 %v268_v47  ;;  %594 = vpow2.f32 %v253_v48  ;;  %v271_v53 = vsel %vm210_vm1, %v837_v49, 0.0 }
 0x213   :  { %v231_v50 = vpop.xlane.xlu2 %230 }
 0x214   :  { %v241_v51 = vsub.f32 %v205_v14, %v231_v50 }
 0x216   :  { %v255_v52 = vmul.f32 1.442695, %v241_v51  ;;  %v844_v54 = vpop.eup %594 }
 0x217   :  { %578 = vrot.lane.b32.xlu2 %v577_v30, %s644_s5  ;;  %272 = vadd.xlane.f32.xlu1 %v271_v53  ;;  %v274_v59 = vsel %vm210_vm1, %v844_v54, 0.0 }
 0x218   :  { %596 = vpow2.f32 %v255_v52 }
 0x21b   :  { %v234_v55 = vpop.xlane.xlu1 %233 }
 0x21c   :  { %v242_v56 = vsub.f32 %v208_v18, %v234_v55 }
 0x21e   :  { %v846_v57 = vpop.eup %596  ;;  %v257_v58 = vmul.f32 1.442695, %v242_v56 }
 0x21f   :  { %v277_v60 = vsel %vm210_vm1, %v846_v57, 0.0  ;;  %275 = vadd.xlane.f32.xlu1 %v274_v59 }
 0x220   :  { %598 = vpow2.f32 %v257_v58  ;;  %278 = vadd.xlane.f32.xlu0 %v277_v60 }
 0x226   :  { %v852_v20 = vpop.eup %598 }
 0x227   :  { %v280_v26 = vsel %vm210_vm1, %v852_v20, 0.0 }
 0x228   :  { %281 = vadd.xlane.f32.xlu0 %v280_v26 }
 0x272   :  { %v261_v30 = vpop.xlane.xlu2 %260 }
 0x273   :  { %600 = vrcp.f32 %v261_v30  ;;  %v294_v6 = vand.u32 2147483648, %v261_v30  ;;  %v292_v14 = vand.u32 2147483647, %v261_v30  ;;  %vm288_vm3 = vweird.f32 %v261_v30 }
 0x275   :  { %v295_v17 = vor.u32 1.1754944e-38, %v294_v6  ;;  %vm293_vm5 = vcmp.eq.f32.partialorder %v292_v14, 8.507059e+37 }
 0x279   :  { %v601_v61 = vpop.eup %600 }
 0x27a   :  { %v284_v62 = vmul.f32 %v601_v61, %v261_v30  ;;  %v264_v63 = vpop.xlane.xlu0 %263  ;;  %v579_v0 = vpop.permute.xlu2 %578  ;;  %vm289_vm2 = vweird.f32 %v601_v61 }
 0x27b   :  { %602 = vrcp.f32 %v264_v63  ;;  %v580_v3 = vunpack.i.l.bf16 %v579_v0  ;;  %v581_v11 = vunpack.i.h.bf16 %v579_v0  ;;  %vm290_vm4 = vmor %vm288_vm3, %vm289_vm2  ;;  %v309_v29 = vand.u32 2147483648, %v264_v63 }
 0x27c   :  { %v285_v1 = vsub.f32 1.0, %v284_v62  ;;  %v307_v31 = vand.u32 2147483647, %v264_v63  ;;  %vm303_vm7 = vweird.f32 %v264_v63 }
 0x27d   :  { %447 = vmatpush.msra.mxu2 %v580_v3  ;;  %569 = vmatpush.msra.mxu3 %v580_v3  ;;  %v310_v35 = vor.u32 1.1754944e-38, %v309_v29 }
 0x27e   :  { %v286_v7 = vmul.f32 %v601_v61, %v285_v1  ;;  %vm308_vm9 = vcmp.eq.f32.partialorder %v307_v31, 8.507059e+37 }
 0x27f   :  { %448 = vmatpush.msra.mxu2 %v581_v11  ;;  %570 = vmatpush.msra.mxu3 %v581_v11 }
 0x280   :  { %v287_v15 = vadd.f32 %v601_v61, %v286_v7 }
 0x281   :  { %v603_v16 = vpop.eup %602 }
 0x282   :  { %v299_v18 = vmul.f32 %v603_v16, %v264_v63  ;;  %v267_v19 = vpop.xlane.xlu1 %266  ;;  %v291_v21 = vsel %vm290_vm4, %v601_v61, %v287_v15  ;;  %vm304_vm6 = vweird.f32 %v603_v16 }
 0x283   :  { %v270_v22 = vpop.xlane.xlu0 %269  ;;  %604 = vrcp.f32 %v267_v19  ;;  %v296_v23 = vsel %vm293_vm5, %v295_v17, %v291_v21  ;;  %vm305_vm8 = vmor %vm303_vm7, %vm304_vm6  ;;  %v324_v47 = vand.u32 2147483648, %v267_v19  ;;  %v322_v48 = vand.u32 2147483647, %v267_v19 }
 0x284   :  { %v300_v24 = vsub.f32 1.0, %v299_v18  ;;  %606 = vrcp.f32 %v270_v22  ;;  %v297_v25 = vmul.f32 %v821_v27, %v296_v23  ;;  %vm318_vm11 = vweird.f32 %v267_v19 }
 0x285   :  { %v325_v58 = vor.u32 1.1754944e-38, %v324_v47  ;;  %vm323_vm13 = vcmp.eq.f32.partialorder %v322_v48, 8.507059e+37  ;;  %v339_v26 = vand.u32 2147483648, %v270_v22  ;;  %vm333_vm15 = vweird.f32 %v270_v22 }
 0x286   :  { %v301_v28 = vmul.f32 %v603_v16, %v300_v24  ;;  %557 = vmatmul.msk.f32.vlgmr.msra.gmra.mxu2 %vm210_vm1, %v297_v25  ;;  %v337_v62 = vand.u32 2147483647, %v270_v22 }
 0x287   :  { %v340_v3 = vor.u32 1.1754944e-38, %v339_v26 }
 0x288   :  { %v302_v32 = vadd.f32 %v603_v16, %v301_v28  ;;  %vm338_vm3 = vcmp.eq.f32.partialorder %v337_v62, 8.507059e+37 }
 0x289   :  { %v605_v33 = vpop.eup %604 }
 0x28a   :  { %v607_v34 = vpop.eup %606  ;;  %v314_v37 = vmul.f32 %v605_v33, %v267_v19  ;;  %v858_v38 = vpop.xlane.xlu1 %272  ;;  %v306_v39 = vsel %vm305_vm8, %v603_v16, %v302_v32  ;;  %vm319_vm10 = vweird.f32 %v605_v33 }
 0x28b   :  { %v329_v40 = vmul.f32 %v607_v34, %v270_v22  ;;  %608 = vrcp.f32 %v858_v38  ;;  %v311_v41 = vsel %vm308_vm9, %v310_v35, %v306_v39  ;;  %vm320_vm12 = vmor %vm318_vm11, %vm319_vm10  ;;  %vm334_vm14 = vweird.f32 %v607_v34 }
 0x28c   :  { %v315_v27 = vsub.f32 1.0, %v314_v37  ;;  %v312_v44 = vmul.f32 %v825_v36, %v311_v41  ;;  %vm335_vm2 = vmor %vm333_vm15, %vm334_vm14  ;;  %vm348_vm5 = vweird.f32 %v858_v38  ;;  %v352_v22 = vand.u32 2147483647, %v858_v38 }
 0x28d   :  { %v330_v42 = vsub.f32 1.0, %v329_v40 }
 0x28e   :  { %v316_v46 = vmul.f32 %v605_v33, %v315_v27  ;;  %558 = vmatmul.msk.f32.gmra.mxu2 %vm210_vm1, %v312_v44  ;;  %vm353_vm9 = vcmp.eq.f32.partialorder %v352_v22, 8.507059e+37 }
 0x28f   :  { %v331_v50 = vmul.f32 %v607_v34, %v330_v42 }
 0x290   :  { %v317_v51 = vadd.f32 %v605_v33, %v316_v46 }
 0x291   :  { %v609_v52 = vpop.eup %608  ;;  %v332_v60 = vadd.f32 %v607_v34, %v331_v50 }
 0x292   :  { %v344_v53 = vmul.f32 %v609_v52, %v858_v38  ;;  %v864_v55 = vpop.xlane.xlu1 %275  ;;  %v321_v56 = vsel %vm320_vm12, %v605_v33, %v317_v51  ;;  %vm349_vm4 = vweird.f32 %v609_v52 }
 0x293   :  { %v279_v59 = vpop.xlane.xlu0 %278  ;;  %610 = vrcp.f32 %v864_v55  ;;  %v326_v30 = vsel %vm323_vm13, %v325_v58, %v321_v56  ;;  %v336_v0 = vsel %vm335_vm2, %v607_v34, %v332_v60  ;;  %vm350_vm6 = vmor %vm348_vm5, %vm349_vm4  ;;  %v369_v39 = vand.u32 2147483648, %v864_v55  ;;  %v491_v58 = vld [vmem:[%s919_s3 + $0x18] sm:$0xff] }
 0x294   :  { %v345_v36 = vsub.f32 1.0, %v344_v53  ;;  %612 = vrcp.f32 %v279_v59  ;;  %v327_v61 = vmul.f32 %v829_v43, %v326_v30  ;;  %v341_v15 = vsel %vm338_vm3, %v340_v3, %v336_v0  ;;  %514 = vmatpush.msrb.mxu3 %v491_v58 }
 0x295   :  { %v354_v43 = vand.u32 2147483648, %v858_v38  ;;  %v384_v19 = vand.u32 2147483648, %v279_v59  ;;  %v342_v21 = vmul.f32 %v831_v45, %v341_v15  ;;  %v382_v24 = vand.u32 2147483647, %v279_v59 }
 0x296   :  { %v346_v63 = vmul.f32 %v609_v52, %v345_v36  ;;  %559 = vmatmul.msk.f32.gmra.mxu2 %vm210_vm1, %v327_v61  ;;  %vm378_vm8 = vweird.f32 %v279_v59  ;;  %vm363_vm13 = vweird.f32 %v864_v55  ;;  %v367_v41 = vand.u32 2147483647, %v864_v55  ;;  %v489_v36 = vld [vmem:[%s919_s3 + $0x8] sm:$0xff] }
 0x297   :  { %v355_v29 = vor.u32 1.1754944e-38, %v354_v43  ;;  %v385_v33 = vor.u32 1.1754944e-38, %v384_v19  ;;  %vm383_vm11 = vcmp.eq.f32.partialorder %v382_v24, 8.507059e+37  ;;  %v370_v50 = vor.u32 1.1754944e-38, %v369_v39 }
 0x298   :  { %v347_v17 = vadd.f32 %v609_v52, %v346_v63  ;;  %vm368_vm3 = vcmp.eq.f32.partialorder %v367_v41, 8.507059e+37 }
 0x299   :  { %v611_v1 = vpop.eup %610 }
 0x29a   :  { %v613_v6 = vpop.eup %612  ;;  %v359_v7 = vmul.f32 %v611_v1, %v864_v55  ;;  %v351_v28 = vsel %vm350_vm6, %v609_v52, %v347_v17  ;;  %vm364_vm12 = vweird.f32 %v611_v1 }
 0x29b   :  { %v374_v11 = vmul.f32 %v613_v6, %v279_v59  ;;  %v282_v14 = vpop.xlane.xlu0 %281  ;;  %vm379_vm7 = vweird.f32 %v613_v6  ;;  %v356_v35 = vsel %vm353_vm9, %v355_v29, %v351_v28  ;;  %vm365_vm14 = vmor %vm363_vm13, %vm364_vm12  ;;  %v490_v59 = vld [vmem:[%s919_s3 + $0x10] sm:$0xff] }
 0x29c   :  { %v360_v16 = vsub.f32 1.0, %v359_v7  ;;  %614 = vrcp.f32 %v282_v14  ;;  %vm380_vm10 = vmor %vm378_vm8, %vm379_vm7  ;;  %v399_v42 = vand.u32 2147483648, %v282_v14  ;;  %v357_v44 = vmul.f32 %v837_v49, %v356_v35  ;;  %515 = vmatpush.msrb.mxu3 %v490_v59 }
 0x29d   :  { %v375_v18 = vsub.f32 1.0, %v374_v11  ;;  %v397_v47 = vand.u32 2147483647, %v282_v14  ;;  %vm393_vm2 = vweird.f32 %v282_v14 }
 0x29e   :  { %v361_v25 = vmul.f32 %v611_v1, %v360_v16  ;;  %560 = vmatmul.msk.f32.gmra.mxu2 %vm210_vm1, %v342_v21  ;;  %516 = vmatpush.msrb.mxu3 %v489_v36 }
 0x29f   :  { %v376_v23 = vmul.f32 %v613_v6, %v375_v18  ;;  %vm398_vm5 = vcmp.eq.f32.partialorder %v397_v47, 8.507059e+37 }
 0x2a0   :  { %v362_v37 = vadd.f32 %v611_v1, %v361_v25 }
 0x2a1   :  { %v377_v31 = vadd.f32 %v613_v6, %v376_v23 }
 0x2a2   :  { %v615_v32 = vpop.eup %614  ;;  %v366_v48 = vsel %vm365_vm14, %v611_v1, %v362_v37 }
 0x2a3   :  { %v389_v34 = vmul.f32 %v615_v32, %v282_v14  ;;  %v381_v45 = vsel %vm380_vm10, %v613_v6, %v377_v31  ;;  %vm394_vm15 = vweird.f32 %v615_v32  ;;  %v371_v52 = vsel %vm368_vm3, %v370_v50, %v366_v48 }
 0x2a4   :  { %v386_v38 = vsel %vm383_vm11, %v385_v33, %v381_v45  ;;  %vm395_vm4 = vmor %vm393_vm2, %vm394_vm15  ;;  %v372_v56 = vmul.f32 %v844_v54, %v371_v52 }
 0x2a5   :  { %v390_v40 = vsub.f32 1.0, %v389_v34  ;;  %v387_v27 = vmul.f32 %v846_v57, %v386_v38  ;;  %v400_v57 = vor.u32 1.1754944e-38, %v399_v42 }
 0x2a6   :  { %561 = vmatmul.msk.f32.gmra.mxu2 %vm210_vm1, %v357_v44 }
 0x2a7   :  { %v391_v46 = vmul.f32 %v615_v32, %v390_v40  ;;  %563 = vmatmul.msk.f32.vlgmr.msra.gmra.mxu3 %vm210_vm1, %v387_v27 }
 0x2a9   :  { %v392_v51 = vadd.f32 %v615_v32, %v391_v46 }
 0x2ab   :  { %v396_v53 = vsel %vm395_vm4, %v615_v32, %v392_v51 }
 0x2ac   :  { %v401_v55 = vsel %vm398_vm5, %v400_v57, %v396_v53 }
 0x2ad   :  { %v402_v49 = vmul.f32 %v852_v20, %v401_v55  ;;  %v488_v20 = vld [vmem:[%s919_s3] sm:$0xff] }
 0x2ae   :  { %562 = vmatmul.msk.f32.gmra.mxu2 %vm210_vm1, %v372_v56  ;;  %517 = vmatpush.msrb.mxu3 %v488_v20 }
 0x2af   :  { %564 = vmatmul.msk.f32.gmra.mxu3 %vm210_vm1, %v402_v49 }
 0x309   :  { %v450_v54 = vpop.f32.mrf.mxu2 }
 0x30a   :  { %v474_v62 = vmul.f32 %v450_v54, %v697_v2 }
 0x311   :  { %v453_v60 = vpop.f32.mrf.mxu2 }
 0x312   :  { %v475_v15 = vmul.f32 %v453_v60, %v724_v8 }
 0x319   :  { %v456_v26 = vpop.f32.mrf.mxu2 }
 0x31a   :  { %v476_v61 = vmul.f32 %v456_v26, %v730_v9 }
 0x31c   :  { %v482_v1 = vadd.f32 %v476_v61, %v474_v62 }
 0x321   :  { %v459_v30 = vpop.f32.mrf.mxu2 }
 0x322   :  { %v477_v11 = vmul.f32 %v459_v30, %v706_v4  ;;  %v583_v4 = vld [vmem:[%s920_s4] ss:$0 sm:$0xff] }
 0x324   :  { %v483_v9 = vadd.f32 %v477_v11, %v475_v15 }
 0x329   :  { %v462_v0 = vpop.f32.mrf.mxu2 }
 0x32a   :  { %v468_v63 = vpop.f32.mrf.mxu3  ;;  %v478_v3 = vmul.f32 %v462_v0, %v712_v5 }
 0x32b   :  { %v480_v7 = vmul.f32 %v468_v63, %v746_v12 }
 0x32c   :  { %v484_v6 = vadd.f32 %v482_v1, %v478_v3 }
 0x32e   :  { %v486_v14 = vadd.f32 %v484_v6, %v480_v7 }
 0x330   :  { %565 = vmatmul.msk.f32.vlgmr.msrb.gmra.mxu3 %vm37_vm0, %v486_v14 }
 0x331   :  { %v465_v16 = vpop.f32.mrf.mxu2 }
 0x332   :  { %v471_v17 = vpop.f32.mrf.mxu3  ;;  %v479_v2 = vmul.f32 %v465_v16, %v736_v10 }
 0x333   :  { %v481_v18 = vmul.f32 %v471_v17, %v753_v13 }
 0x334   :  { %v485_v43 = vadd.f32 %v483_v9, %v479_v2 }
 0x336   :  { %v487_v19 = vadd.f32 %v485_v43, %v481_v18 }
 0x338   :  { %566 = vmatmul.msk.f32.gmra.mxu3 %vm37_vm0, %v487_v19 }
 0x3b3   :  { %v519_v5 = vpop.f32.mrf.mxu3 }
 0x3b4   :  { %v520_v12 = vadd.f32 %v583_v4, %v519_v5 }
 0x3b6   :  { %525 = vst.msk [vmem:[#allocation2] sm:$0xff] %vm37_vm0, %v520_v12 }
 0x3bb   :  { %v522_v8 = vpop.f32.mrf.mxu3 }
 0x3bc   :  { %v523_v10 = vadd.f32 %v583_v4, %v522_v8 }
 0x3be   :  { %526 = vst.msk [vmem:[#allocation2 + $0x8] sm:$0xff] %vm37_vm0, %v523_v10 }
 0x3bf   :  { %539 = dma.vmem_to_hbm [thread:$0]  %s532_s6, 256, %s534_s8, [#allocation3], %s646_s9, %s646_s9, %s647_s10  }
 0x3c0   :  { %640 = dma.done.wait [#allocation3], 256  }
 0x3c1   :  { %641 = vsyncadd [#allocation3], 4294967040 }
 0x3c2   :  { %544 = vsyncpa [#allocation3], 1 }

</bundles_post_ra>
